<compile_context>
chip_gen: v7x
topology: tpu7x:2x2x1
jax: 0.10.0
libtpu: 0.0.40
codegen_flags: <defaults>
</compile_context>

<pallas_src>
import functools

import jax
import jax.numpy as jnp
import numpy as np
from jax.experimental import pallas as pl
from jax.experimental.pallas import tpu as pltpu


def _round_up(x, m):
    return (x + m - 1) // m * m


# ---------------------------------------------------------------------------
# Kernel 1: hoisted input projection  G_in = X @ W_x + b_x   (all timesteps)
# ---------------------------------------------------------------------------
def _input_proj_kernel(x_ref, wx_ref, bx_ref, gin_ref):
    gin_ref[...] = (jnp.dot(x_ref[...], wx_ref[...],
                            preferred_element_type=jnp.float32)
                    + bx_ref[...])


def _input_projection(x2d, w_x, b_x, *, tile_m):
    M, Ep = x2d.shape
    G3 = w_x.shape[1]
    return pl.pallas_call(
        _input_proj_kernel,
        out_shape=jax.ShapeDtypeStruct((M, G3), jnp.float32),
        grid=(M // tile_m,),
        in_specs=[pl.BlockSpec((tile_m, Ep), lambda i: (i, 0)),   # X rows streamed
                  pl.BlockSpec((Ep, G3), lambda i: (0, 0)),       # W_x resident
                  pl.BlockSpec((1, G3), lambda i: (0, 0))],       # fused bias row
        out_specs=pl.BlockSpec((tile_m, G3), lambda i: (i, 0)),
        compiler_params=pltpu.CompilerParams(
            dimension_semantics=("parallel",)),
    )(x2d, w_x, b_x)


# ---------------------------------------------------------------------------
# Kernel 2: GRU recurrence, T streamed through the grid, h in VMEM scratch.
# Grid = (batch_blocks, T) with semantics ("parallel", "arbitrary").
# ---------------------------------------------------------------------------
def _gru_recurrence_kernel(gin_ref, wh_ref, bhn_ref, h0_ref,
                           out_ref, hout_ref, h_scr, *, hp):
    """gin_ref:  (1, Bblk, 3Hp) f32  per-step fused input pre-activations
       wh_ref:   (Hp, 3Hp)         hidden weight, column blocks [r|z|n]
       bhn_ref:  (Bblk, Hp)        pre-broadcast hidden n-gate bias
       h0_ref:   (Bblk, Hp)        initial hidden state for this batch block
       out_ref:  (1, Bblk, Hp)     per-step hidden state (pipelined writeback)
       hout_ref: (Bblk, Hp)        final hidden state (written at t == T-1)
       h_scr:    (Bblk, Hp) VMEM   recurrent state carried across grid steps"""
    Hp = hp
    t = pl.program_id(1)

    @pl.when(t == 0)
    def _():
        h_scr[...] = h0_ref[...]

    h = h_scr[...]                                           # (Bblk, Hp) f32
    gin = gin_ref[0]                                         # (Bblk, 3Hp) f32

    # Only the hidden-side matmul sits on the recurrence.
    gh = jnp.dot(h.astype(wh_ref.dtype), wh_ref[...],
                 preferred_element_type=jnp.float32)         # (Bblk, 3Hp)

    r = jax.nn.sigmoid(gin[:, 0 * Hp:1 * Hp] + gh[:, 0 * Hp:1 * Hp])
    z = jax.nn.sigmoid(gin[:, 1 * Hp:2 * Hp] + gh[:, 1 * Hp:2 * Hp])
    n = jnp.tanh(gin[:, 2 * Hp:3 * Hp]
                 + r * (gh[:, 2 * Hp:3 * Hp] + bhn_ref[...]))
    h_new = n + z * (h - n)                                  # == (1-z)*n + z*h

    h_scr[...] = h_new
    out_ref[0] = h_new                                       # lane-dense store

    @pl.when(t == pl.num_programs(1) - 1)
    def _():
        hout_ref[...] = h_new


def encoder_rnn_forward(params, input_ids, hidden, *, mxu_dtype=jnp.float32):
    """input_ids: (B, T) int32, hidden: (1, B, H) f32
       -> (out (B, T, H), hidden (1, B, H)) -- same as the PyTorch module."""
    B, T = input_ids.shape
    H = params["hidden_dim"]
    emb = params["embedding"]                      # (V, E)
    V, E = emb.shape

    Bp = max(8, _round_up(B, 8))                   # sublane-pad batch
    Ep = _round_up(E, 128)                         # lane-pad embedding dim
    Hp = _round_up(H, 128)                         # lane-pad hidden dim
    G3 = 3 * Hp

    # Batch blocks: single block at small batch; at large batch the leading
    # "parallel" grid axis shards the recurrence across v7x's two TensorCores.
    Bblk = Bp if Bp <= 64 else 64
    Bp = _round_up(Bp, Bblk)
    nb = Bp // Bblk

    # Row tile for the hoisted input GEMM; pad T so tiles divide evenly.
    tT = max(1, min(T, 512 // Bp))
    Tp = _round_up(T, tT)
    tile_m = tT * Bp

    # --- Embedding gather in the wrapper (no table DMA into the kernel). ---
    # nn.Embedding errors on OOB ids; our gather must stay in bounds -> clip.
    ids = jnp.clip(input_ids.astype(jnp.int32), 0, V - 1)
    ids_tm = jnp.pad(jnp.transpose(ids, (1, 0)),
                     ((0, Tp - T), (0, Bp - B)))             # (Tp, Bp) time-major
    emb_p = jnp.zeros((V, Ep), jnp.float32).at[:, :E].set(emb)
    x2d = emb_p[ids_tm.reshape(-1)].astype(mxu_dtype)        # (Tp*Bp, Ep)

    # --- Fused, lane-aligned gate weights / biases (padding stays exact 0,
    #     also after any mxu_dtype cast, so padded h lanes provably stay 0). ---
    w_ih, w_hh = params["w_ih"], params["w_hh"]    # (3H, E), (3H, H); gates r,z,n
    b_ih, b_hh = params["b_ih"], params["b_hh"]    # (3H,)

    w_x = jnp.zeros((Ep, G3), jnp.float32)
    w_x = w_x.at[:E, 0 * Hp:0 * Hp + H].set(w_ih[0 * H:1 * H].T)   # W_ir
    w_x = w_x.at[:E, 1 * Hp:1 * Hp + H].set(w_ih[1 * H:2 * H].T)   # W_iz
    w_x = w_x.at[:E, 2 * Hp:2 * Hp + H].set(w_ih[2 * H:3 * H].T)   # W_in

    w_h = jnp.zeros((Hp, G3), jnp.float32)
    w_h = w_h.at[:H, 0 * Hp:0 * Hp + H].set(w_hh[0 * H:1 * H].T)   # W_hr
    w_h = w_h.at[:H, 1 * Hp:1 * Hp + H].set(w_hh[1 * H:2 * H].T)   # W_hz
    w_h = w_h.at[:H, 2 * Hp:2 * Hp + H].set(w_hh[2 * H:3 * H].T)   # W_hn

    b_x = jnp.zeros((1, G3), jnp.float32)
    b_x = b_x.at[0, 0 * Hp:0 * Hp + H].set(b_ih[0 * H:1 * H] + b_hh[0 * H:1 * H])
    b_x = b_x.at[0, 1 * Hp:1 * Hp + H].set(b_ih[1 * H:2 * H] + b_hh[1 * H:2 * H])
    b_x = b_x.at[0, 2 * Hp:2 * Hp + H].set(b_ih[2 * H:3 * H])

    # Pre-broadcast hidden n-gate bias (avoids per-step broadcast_in_dim).
    b_hn = jnp.zeros((Bblk, Hp), jnp.float32).at[:, :H].set(
        jnp.broadcast_to(b_hh[2 * H:3 * H], (Bblk, H)))

    h0 = jnp.zeros((Bp, Hp), jnp.float32).at[:B, :H].set(hidden[0])

    # --- Stage 1: one big input GEMM for all timesteps. ---
    gin2d = _input_projection(x2d, w_x.astype(mxu_dtype), b_x, tile_m=tile_m)
    gin = gin2d.reshape(Tp, Bp, G3)   # leading-dim split only; no data movement

    # --- Stage 2: recurrence, T streamed through the grid. ---
    kernel = functools.partial(_gru_recurrence_kernel, hp=Hp)

    vmem_est = 4 * (2 * Bblk * G3          # gin blocks (double-buffered)
                    + 2 * Hp * G3          # resident W_h buffers
                    + 2 * Bblk * Hp * 4    # b_hn, h0, out, hout blocks
                    + Bblk * Hp)           # h scratch
    vmem_limit = int(min(max(2 * vmem_est + (1 << 20), 8 << 20), 64 << 20))

    out_tbh, h_final = pl.pallas_call(
        kernel,
        out_shape=(jax.ShapeDtypeStruct((T, Bp, Hp), jnp.float32),
                   jax.ShapeDtypeStruct((Bp, Hp), jnp.float32)),
        grid_spec=pltpu.PrefetchScalarGridSpec(
            num_scalar_prefetch=0,
            grid=(nb, T),
            in_specs=[
                pl.BlockSpec((1, Bblk, G3), lambda b, t: (t, b, 0)),  # gin (streamed)
                pl.BlockSpec((Hp, G3), lambda b, t: (0, 0)),          # W_h (resident)
                pl.BlockSpec((Bblk, Hp), lambda b, t: (0, 0)),        # b_hn
                pl.BlockSpec((Bblk, Hp), lambda b, t: (b, 0)),        # h0
            ],
            out_specs=(
                pl.BlockSpec((1, Bblk, Hp), lambda b, t: (t, b, 0)),  # per-step h
                pl.BlockSpec((Bblk, Hp), lambda b, t: (b, 0)),        # final h
            ),
            scratch_shapes=[pltpu.VMEM((Bblk, Hp), jnp.float32)]),
        compiler_params=pltpu.CompilerParams(
            dimension_semantics=("parallel", "arbitrary"),
            vmem_limit_bytes=vmem_limit),
    )(gin, w_h.astype(mxu_dtype), b_hn, h0)

    # TODO(synk): batch-major stores from the kernel would need second-minor
    # blocks of size 1 (violates the (8,128) block rule), so the batch_first
    # transpose happens here; at large T*H it costs one extra HBM round trip.
    out = jnp.transpose(out_tbh, (1, 0, 2))[:B, :, :H]   # (B, T, H)
    h_out = h_final[:B, :H][None]                        # (1, B, H)
    return out, h_out


def init_params(key, vocab_size, embedding_dim, hidden_dim):
    """Synthetic parameters matching PyTorch shapes."""
    V, E, H = vocab_size, embedding_dim, hidden_dim
    k = jax.random.split(key, 5)
    bound = 1.0 / np.sqrt(H)
    u = lambda kk, shape: jax.random.uniform(kk, shape, jnp.float32, -bound, bound)
    return {
        "hidden_dim": H,
        "embedding": jax.random.normal(k[0], (V, E), jnp.float32),  # nn.Embedding: N(0,1)
        "w_ih": u(k[1], (3 * H, E)),   # GRU weight_ih_l0, gate order [r, z, n]
        "w_hh": u(k[2], (3 * H, H)),   # GRU weight_hh_l0
        "b_ih": u(k[3], (3 * H,)),
        "b_hh": u(k[4], (3 * H,)),
    }


def reference_forward(params, input_ids, hidden):
    """Pure-JAX reference of the PyTorch EncoderRNN forward."""
    H = params["hidden_dim"]
    emb = params["embedding"][input_ids]          # (B, T, E)
    h = hidden[0]                                 # (B, H)
    w_ih, w_hh = params["w_ih"], params["w_hh"]
    b_ih, b_hh = params["b_ih"], params["b_hh"]
    outs = []
    for t in range(input_ids.shape[1]):
        x_t = emb[:, t, :]
        gi = x_t @ w_ih.T + b_ih
        gh = h @ w_hh.T + b_hh
        r = jax.nn.sigmoid(gi[:, :H] + gh[:, :H])
        z = jax.nn.sigmoid(gi[:, H:2 * H] + gh[:, H:2 * H])
        n = jnp.tanh(gi[:, 2 * H:] + r * gh[:, 2 * H:])
        h = (1.0 - z) * n + z * h
        outs.append(h)
    out = jnp.stack(outs, axis=1)                 # (B, T, H)
    return out, h[None]


if __name__ == "__main__":
    # TODO(synk): encoder_gru.flatten_parameters() is a cuDNN weight-relayout
    # call with no mathematical effect; intentionally omitted.
    B, T, V, E, H = 2, 8, 16, 16, 32

    key = jax.random.PRNGKey(0)
    k_params, k_ids, k_h = jax.random.split(key, 3)

    params = init_params(k_params, vocab_size=V, embedding_dim=E, hidden_dim=H)
    input_ids = jax.random.randint(k_ids, (B, T), 0, V, dtype=jnp.int32)
    hidden0 = jax.random.normal(k_h, (1, B, H), jnp.float32)

    out, hidden_out = encoder_rnn_forward(params, input_ids, hidden0)
    jax.block_until_ready((out, hidden_out))

    ref_out, ref_hidden = reference_forward(params, input_ids, hidden0)
    assert out.shape == (B, T, H) and hidden_out.shape == (1, B, H)
    np.testing.assert_allclose(np.asarray(out), np.asarray(ref_out),
                               rtol=2e-4, atol=2e-4)
    np.testing.assert_allclose(np.asarray(hidden_out), np.asarray(ref_hidden),
                               rtol=2e-4, atol=2e-4)

    print("KERNEL_OK")
</pallas_src>

<mosaic_0001>
module attributes {stable_mosaic.version = 11 : i64} {
  func.func @_input_proj_kernel(%arg0: i32, %arg1: memref<64x128xf32, #tpu.memory_space<vmem>>, %arg2: memref<128x384xf32, #tpu.memory_space<vmem>>, %arg3: memref<1x384xf32, #tpu.memory_space<vmem>>, %arg4: memref<64x384xf32, #tpu.memory_space<vmem>>) attributes {dimension_semantics = [#tpu.dimension_semantics<parallel>], iteration_bounds = array<i64: 1>, scalar_prefetch = 0 : i64, scratch_operands = 0 : i64, tpu.core_type = #tpu.core_type<tc>, window_params = [{transform_indices = @transform_0, window_bounds = array<i64: 64, 128>}, {pipeline_mode = #tpu.pipeline_mode<synchronous>, transform_indices = @transform_1, window_bounds = array<i64: 128, 384>}, {pipeline_mode = #tpu.pipeline_mode<synchronous>, transform_indices = @transform_2, window_bounds = array<i64: 1, 384>}, {transform_indices = @transform_3, window_bounds = array<i64: 64, 384>}]} {
    %c0 = arith.constant 0 : index
    %c0_0 = arith.constant 0 : index
    %0 = vector.load %arg1[%c0, %c0_0] : memref<64x128xf32, #tpu.memory_space<vmem>>, vector<64x128xf32>
    %c0_1 = arith.constant 0 : index
    %c0_2 = arith.constant 0 : index
    %1 = vector.load %arg2[%c0_1, %c0_2] : memref<128x384xf32, #tpu.memory_space<vmem>>, vector<128x384xf32>
    %cst = arith.constant dense<0.000000e+00> : vector<64x384xf32>
    %2 = tpu.matmul %0, %1, %cst {dimension_numbers = #tpu.dot_dimension_numbers<[1], [0], [0], [1], [0, 0, 1, 1], [], []>} : vector<64x128xf32>, vector<128x384xf32>, vector<64x384xf32> -> vector<64x384xf32>
    %c0_3 = arith.constant 0 : index
    %c0_4 = arith.constant 0 : index
    %3 = vector.load %arg3[%c0_3, %c0_4] : memref<1x384xf32, #tpu.memory_space<vmem>>, vector<1x384xf32>
    %4 = vector.broadcast %3 : vector<1x384xf32> to vector<64x384xf32>
    %5 = arith.addf %2, %4 : vector<64x384xf32>
    %c0_5 = arith.constant 0 : index
    %c0_6 = arith.constant 0 : index
    %6 = vector.load %arg4[%c0_5, %c0_6] : memref<64x384xf32, #tpu.memory_space<vmem>>, vector<64x384xf32>
    tpu.vector_store %arg4[%c0_5, %c0_6], %5 {strides = array<i32>} : memref<64x384xf32, #tpu.memory_space<vmem>>, vector<64x384xf32>,
    return
  }
  func.func @transform_0(%arg0: i32) -> (i32, i32) {
    %c0_i32 = arith.constant 0 : i32
    %c0_i32_0 = arith.constant 0 : i32
    return %arg0, %c0_i32 : i32, i32
  }
  func.func @transform_1(%arg0: i32) -> (i32, i32) {
    %c0_i32 = arith.constant 0 : i32
    %c0_i32_0 = arith.constant 0 : i32
    %c0_i32_1 = arith.constant 0 : i32
    return %c0_i32, %c0_i32_0 : i32, i32
  }
  func.func @transform_2(%arg0: i32) -> (i32, i32) {
    %c0_i32 = arith.constant 0 : i32
    %c0_i32_0 = arith.constant 0 : i32
    %c0_i32_1 = arith.constant 0 : i32
    return %c0_i32, %c0_i32_0 : i32, i32
  }
  func.func @transform_3(%arg0: i32) -> (i32, i32) {
    %c0_i32 = arith.constant 0 : i32
    %c0_i32_0 = arith.constant 0 : i32
    return %arg0, %c0_i32 : i32, i32
  }
}

</mosaic_0001>

<bundles_post_ra>
// kernel: tpu_custom_call.1
= control target key start
LH: loop header
LB: loop body
LE: loop exit
PB: predicated region body
PF: predicated region fallthrough
CT: control target
= control target key end

     0   :  { %8 = vsyncpa [#allocation3], 0  ;;  %s689_s0 = inlined_call_operand.hbm [shape: f32[64,128], index: 0, kind: input, shape index: {}]   ;;  %s690_s1 = inlined_call_operand.hbm [shape: f32[128,384], index: 1, kind: input, shape index: {}]   ;;  %s691_s2 = inlined_call_operand.vmem [shape: f32[1,384], index: 2, kind: input, shape index: {}]   ;;  %s692_s3 = inlined_call_operand.hbm [shape: f32[64,384], index: 3, kind: output, shape index: {}]  }
   0x1   :  { %9 = vsyncpa [#allocation6], 0 }
   0x2   :  { %10 = vsyncpa [#allocation4], 0  ;;  %s588_s12 = smov [#allocation2]   ;;  %s516_s16 = scalar_lea.hbm %s689_s0, 1024 }
   0x3   :  { %s16_s13 = sshll.u32 %s588_s12, 4  ;;  %p517_p0 = scmp.ne.s32.totalorder %s689_s0, %s516_s16  ;;  %s17_s13 = int_to_ptr.vmem [resolvable:$true] %s16_s13 }
   0x4   :  { %p520_p1 = scmp.lt.u32.totalorder %s516_s16, %s689_s0 }
   0x6   :  { %p522_p2 = pnand %p520_p1, %p517_p0 }
   0x8   :  { %525 = shalt.err (!%p522_p2)
}
   0x9   :  { %s526_s21 = scalar_lea.vmem %s17_s13, 1024  ;;  %p531_p4 = scmp.lt.s32.totalorder %s17_s13, %s17_s13 }
   0xa   :  { %p527_p3 = scmp.ne.s32.totalorder %s17_s13, %s526_s21  ;;  %p532_p5 = scmp.lt.s32.totalorder %s526_s21, %s526_s21 }
   0xc   :  { %p533_p6 = por %p532_p5, %p531_p4 }
   0xe   :  { %p534_p7 = pnand %p533_p6, %p527_p3 }
  0x10   :  { %537 = shalt.err (!%p534_p7)
}
  0x11   :  { %s589_s22 = smov 128   ;;  %s590_s23 = smov 8  }
  0x12   :  { %22 = dma.hbm_to_vmem [thread:$0]  %s689_s0, 1024, %s17_s13, [#allocation3], %s589_s22, %s589_s22, %s590_s23  }
  0x13   :  { %s591_s26 = smov [#allocation5]   ;;  %s538_s30 = scalar_lea.hbm %s690_s1, 6144 }
  0x14   :  { %s28_s27 = sshll.u32 %s591_s26, 4  ;;  %p539_p8 = scmp.ne.s32.totalorder %s690_s1, %s538_s30  ;;  %s29_s27 = int_to_ptr.vmem [resolvable:$true] %s28_s27 }
  0x15   :  { %p542_p9 = scmp.lt.u32.totalorder %s538_s30, %s690_s1 }
  0x17   :  { %p544_p10 = pnand %p542_p9, %p539_p8 }
  0x19   :  { %547 = shalt.err (!%p544_p10)
}
  0x1a   :  { %s548_s8 = scalar_lea.vmem %s29_s27, 6144  ;;  %p553_p12 = scmp.lt.s32.totalorder %s29_s27, %s29_s27 }
  0x1b   :  { %p549_p11 = scmp.ne.s32.totalorder %s29_s27, %s548_s8  ;;  %p554_p13 = scmp.lt.s32.totalorder %s548_s8, %s548_s8 }
  0x1d   :  { %p555_p0 = por %p554_p13, %p553_p12 }
  0x1f   :  { %p556_p1 = pnand %p555_p0, %p549_p11 }
  0x21   :  { %559 = shalt.err (!%p556_p1)
}
  0x22   :  { %s592_s0 = smov 384   ;;  %s593_s9 = smov 24  }
  0x23   :  { %34 = dma.hbm_to_vmem [thread:$0]  %s690_s1, 6144, %s29_s27, [#allocation6], %s592_s0, %s592_s0, %s593_s9  }
  0x24   :  { %582 = dma.done.wait [#allocation3], 1024  }
  0x25   :  { %583 = vsyncadd [#allocation3], 4294966272 }
  0x26   :  { %584 = dma.done.wait [#allocation6], 6144  }
  0x27   :  { %585 = vsyncadd [#allocation6], 4294961152  ;;  %v594_v0 = vmov 0.0   ;;  %v52_v1 = vld [vmem:[#allocation5 + $0x8] sm:$0xff]  ;;  %v55_v2 = vld [vmem:[#allocation5 + $0x20] sm:$0xff] }
  0x28   :  { %180 = vmatprep.mubr.f32.mxu0 %v594_v0  ;;  %v51_v3 = vld [vmem:[#allocation5] sm:$0xff]  ;;  %v444_v4 = vpack.c.bf16 %v55_v2, %v52_v1  ;;  %v54_v5 = vld [vmem:[#allocation5 + $0x18] sm:$0xff]  ;;  %v61_v7 = vld [vmem:[#allocation5 + $0x50] sm:$0xff] }
  0x29   :  { %v58_v6 = vld [vmem:[#allocation5 + $0x38] sm:$0xff]  ;;  %v446_v8 = vpack.c.bf16 %v54_v5, %v51_v3  ;;  %v57_v10 = vld [vmem:[#allocation5 + $0x30] sm:$0xff]  ;;  %v60_v11 = vld [vmem:[#allocation5 + $0x48] sm:$0xff] }
  0x2a   :  { %v448_v9 = vpack.c.bf16 %v61_v7, %v58_v6  ;;  %v64_v12 = vld [vmem:[#allocation5 + $0x68] sm:$0xff]  ;;  %445 = vmatprep.subr.bf16.mxu0 %v444_v4  ;;  %v67_v13 = vld [vmem:[#allocation5 + $0x80] sm:$0xff]  ;;  %v450_v14 = vpack.c.bf16 %v60_v11, %v57_v10  ;;  %v66_v17 = vld [vmem:[#allocation5 + $0x78] sm:$0xff] }
  0x2b   :  { %447 = vmatpush1.bf16.msra.mxu0 %v446_v8  ;;  %v63_v15 = vld [vmem:[#allocation5 + $0x60] sm:$0xff]  ;;  %v452_v16 = vpack.c.bf16 %v67_v13, %v64_v12  ;;  %v53_v18 = vld [vmem:[#allocation5 + $0x10] sm:$0xff]  ;;  %v56_v19 = vld [vmem:[#allocation5 + $0x28] sm:$0xff] }
  0x2c   :  { %449 = vmatprep.subr.bf16.mxu0 %v448_v9  ;;  %v70_v20 = vld [vmem:[#allocation5 + $0x98] sm:$0xff]  ;;  %v73_v21 = vld [vmem:[#allocation5 + $0xb0] sm:$0xff]  ;;  %v476_v22 = vpack.c.bf16 %v56_v19, %v53_v18  ;;  %v59_v23 = vld [vmem:[#allocation5 + $0x40] sm:$0xff]  ;;  %v454_v25 = vpack.c.bf16 %v66_v17, %v63_v15  ;;  %v101_v18 = vlaneseq }
  0x2d   :  { %v62_v24 = vld [vmem:[#allocation5 + $0x58] sm:$0xff]  ;;  %v69_v26 = vld [vmem:[#allocation5 + $0x90] sm:$0xff]  ;;  %v456_v28 = vpack.c.bf16 %v73_v21, %v70_v20  ;;  %v72_v29 = vld [vmem:[#allocation5 + $0xa8] sm:$0xff] }
  0x2e   :  { %477 = vmatprep.subr.bf16.mxu1 %v476_v22  ;;  %v480_v27 = vpack.c.bf16 %v62_v24, %v59_v23  ;;  %v65_v30 = vld [vmem:[#allocation5 + $0x70] sm:$0xff]  ;;  %v68_v31 = vld [vmem:[#allocation5 + $0x88] sm:$0xff]  ;;  %v79_v33 = vld [vmem:[#allocation5 + $0xe0] sm:$0xff]  ;;  %v458_v37 = vpack.c.bf16 %v72_v29, %v69_v26  ;;  %v102_v19 = vshrl.u32 %v101_v18, 7 }
  0x2f   :  { %451 = vmatpush1.bf16.msra.mxu0 %v450_v14  ;;  %479 = vmatpush3.bf16.msra.mxu1 %v476_v22  ;;  %v76_v32 = vld [vmem:[#allocation5 + $0xc8] sm:$0xff]  ;;  %v484_v34 = vpack.c.bf16 %v68_v31, %v65_v30  ;;  %v71_v35 = vld [vmem:[#allocation5 + $0xa0] sm:$0xff]  ;;  %v74_v36 = vld [vmem:[#allocation5 + $0xb8] sm:$0xff] }
  0x30   :  { %453 = vmatprep.subr.bf16.mxu0 %v452_v16  ;;  %481 = vmatprep.subr.bf16.mxu1 %v480_v27  ;;  %v460_v38 = vpack.c.bf16 %v79_v33, %v76_v32  ;;  %v75_v39 = vld [vmem:[#allocation5 + $0xc0] sm:$0xff]  ;;  %v78_v40 = vld [vmem:[#allocation5 + $0xd8] sm:$0xff]  ;;  %v85_v42 = vld [vmem:[#allocation5 + $0x110] sm:$0xff]  ;;  %v488_v43 = vpack.c.bf16 %v74_v36, %v71_v35  ;;  %v103_v20 = vsub.s32 0, %v102_v19  ;;  %v107_v22 = vsub.s32 1, %v102_v19 }
  0x31   :  { %v82_v41 = vld [vmem:[#allocation5 + $0xf8] sm:$0xff]  ;;  %v43_v44 = vld [vmem:[#allocation2] sm:$0xff]  ;;  %v77_v45 = vld [vmem:[#allocation5 + $0xd0] sm:$0xff]  ;;  %v462_v47 = vpack.c.bf16 %v78_v40, %v75_v39 }
  0x32   :  { %v80_v46 = vld [vmem:[#allocation5 + $0xe8] sm:$0xff]  ;;  %432 = vmatprep.mubr.f32.mxu1 %v43_v44  ;;  %v464_v48 = vpack.c.bf16 %v85_v42, %v82_v41  ;;  %v81_v49 = vld [vmem:[#allocation5 + $0xf0] sm:$0xff]  ;;  %v91_v52 = vld [vmem:[#allocation5 + $0x140] sm:$0xff] }
  0x33   :  { %455 = vmatpush1.bf16.msra.mxu0 %v454_v25  ;;  %483 = vmatpush3.bf16.msra.mxu1 %v480_v27  ;;  %v84_v50 = vld [vmem:[#allocation5 + $0x108] sm:$0xff]  ;;  %v492_v53 = vpack.c.bf16 %v80_v46, %v77_v45  ;;  %v83_v54 = vld [vmem:[#allocation5 + $0x100] sm:$0xff]  ;;  %v86_v55 = vld [vmem:[#allocation5 + $0x118] sm:$0xff]  ;;  %v111_v25 = vsub.s32 2, %v102_v19 }
  0x34   :  { %457 = vmatprep.subr.bf16.mxu0 %v456_v28  ;;  %485 = vmatprep.subr.bf16.mxu1 %v484_v34  ;;  %v88_v51 = vld [vmem:[#allocation5 + $0x128] sm:$0xff]  ;;  %v466_v56 = vpack.c.bf16 %v84_v50, %v81_v49  ;;  %v87_v58 = vld [vmem:[#allocation5 + $0x120] sm:$0xff]  ;;  %v90_v59 = vld [vmem:[#allocation5 + $0x138] sm:$0xff]  ;;  %v496_v62 = vpack.c.bf16 %v86_v55, %v83_v54 }
  0x35   :  { %v468_v57 = vpack.c.bf16 %v91_v52, %v88_v51  ;;  %v94_v60 = vld [vmem:[#allocation5 + $0x158] sm:$0xff]  ;;  %v97_v61 = vld [vmem:[#allocation5 + $0x170] sm:$0xff]  ;;  %v92_v1 = vld [vmem:[#allocation5 + $0x148] sm:$0xff]  ;;  %v470_v2 = vpack.c.bf16 %v90_v59, %v87_v58 }
  0x36   :  { %v89_v63 = vld [vmem:[#allocation5 + $0x130] sm:$0xff]  ;;  %v472_v3 = vpack.c.bf16 %v97_v61, %v94_v60  ;;  %v96_v5 = vld [vmem:[#allocation5 + $0x168] sm:$0xff]  ;;  %v95_v7 = vld [vmem:[#allocation5 + $0x160] sm:$0xff] }
  0x37   :  { %459 = vmatpush1.bf16.msra.mxu0 %v458_v37  ;;  %487 = vmatpush3.bf16.msra.mxu1 %v484_v34  ;;  %v93_v4 = vld [vmem:[#allocation5 + $0x150] sm:$0xff]  ;;  %v500_v6 = vpack.c.bf16 %v92_v1, %v89_v63  ;;  %v98_v8 = vld [vmem:[#allocation5 + $0x178] sm:$0xff]  ;;  %v44_v11 = vld [vmem:[#allocation2 + $0x8] sm:$0xff] }
  0x38   :  { %461 = vmatprep.subr.bf16.mxu0 %v460_v38  ;;  %489 = vmatprep.subr.bf16.mxu1 %v488_v43  ;;  %v474_v9 = vpack.c.bf16 %v96_v5, %v93_v4  ;;  %v504_v10 = vpack.c.bf16 %v98_v8, %v95_v7  ;;  %v45_v12 = vld [vmem:[#allocation2 + $0x10] sm:$0xff]  ;;  %v46_v13 = vld [vmem:[#allocation2 + $0x18] sm:$0xff]  ;;  %v47_v14 = vld [vmem:[#allocation2 + $0x20] sm:$0xff] }
  0x39   :  { %v48_v15 = vld [vmem:[#allocation2 + $0x28] sm:$0xff]  ;;  %v49_v16 = vld [vmem:[#allocation2 + $0x30] sm:$0xff]  ;;  %v50_v17 = vld [vmem:[#allocation2 + $0x38] sm:$0xff] }
  0x3a   :  { %v99_v21 = vld [vmem:[%s691_s2] sm:$0x7]  ;;  %s595_s2 = smov [#allocation7]  }
  0x3b   :  { %463 = vmatpush1.bf16.msra.mxu0 %v462_v47  ;;  %491 = vmatpush3.bf16.msra.mxu1 %v488_v43  ;;  %v654_v23 = vrot.slane %v99_v21, %v103_v20  ;;  %v656_v24 = vrot.slane %v99_v21, %v107_v22  ;;  %v112_v29 = vrot.slane %v99_v21, %v111_v25  ;;  %s363_s13 = sshll.u32 %s595_s2, 4  ;;  %s364_s13 = int_to_ptr.vmem [resolvable:$true] %s363_s13 }
  0x3c   :  { %465 = vmatprep.subr.bf16.mxu0 %v464_v48  ;;  %493 = vmatprep.subr.bf16.mxu1 %v492_v53  ;;  %s560_s14 = scalar_lea.vmem %s364_s13, 3072  ;;  %p565_p3 = scmp.lt.s32.totalorder %s364_s13, %s364_s13 }
  0x3d   :  { %p561_p2 = scmp.ne.s32.totalorder %s364_s13, %s560_s14  ;;  %p566_p4 = scmp.lt.s32.totalorder %s560_s14, %s560_s14 }
  0x3f   :  { %467 = vmatpush1.bf16.msra.mxu0 %v466_v56  ;;  %495 = vmatpush3.bf16.msra.mxu1 %v492_v53  ;;  %p567_p5 = por %p566_p4, %p565_p3 }
  0x40   :  { %469 = vmatprep.subr.bf16.mxu0 %v468_v57  ;;  %497 = vmatprep.subr.bf16.mxu1 %v496_v62 }
  0x41   :  { %p568_p6 = pnand %p567_p5, %p561_p2 }
  0x43   :  { %471 = vmatpush1.bf16.msra.mxu0 %v470_v2  ;;  %499 = vmatpush3.bf16.msra.mxu1 %v496_v62 }
  0x44   :  { %473 = vmatprep.subr.bf16.mxu0 %v472_v3  ;;  %501 = vmatprep.subr.bf16.mxu1 %v500_v6 }
  0x47   :  { %475 = vmatpush1.bf16.msra.mxu0 %v474_v9  ;;  %503 = vmatpush3.bf16.msra.mxu1 %v500_v6 }
  0x48   :  { %505 = vmatprep.subr.bf16.mxu1 %v504_v10 }
  0x4a   :  { %181 = vmatmul.mubr.f32.vlgmr.msra.gmra.mrb[0].mxu0 %v43_v44 }
  0x4b   :  { %186 = vmatprep.mubr.f32.mxu0 %v594_v0  ;;  %507 = vmatpush3.bf16.msra.mxu1 %v504_v10 }
  0x4e   :  { %187 = vmatmul.mubr.f32.gmra.mrb[2].mxu0 %v44_v11  ;;  %433 = vmatmul.mubr.f32.vlgmr.msra.gmra.mrb[0].mxu1 %v44_v11 }
  0x4f   :  { %192 = vmatprep.mubr.f32.mxu0 %v594_v0  ;;  %435 = vmatprep.mubr.f32.mxu1 %v45_v12 }
  0x52   :  { %193 = vmatmul.mubr.f32.gmra.mrb[4].mxu0 %v45_v12  ;;  %436 = vmatmul.mubr.f32.gmra.mrb[2].mxu1 %v46_v13 }
  0x53   :  { %198 = vmatprep.mubr.f32.mxu0 %v594_v0  ;;  %438 = vmatprep.mubr.f32.mxu1 %v47_v14 }
  0x56   :  { %199 = vmatmul.mubr.f32.gmra.mrb[6].mxu0 %v46_v13  ;;  %439 = vmatmul.mubr.f32.gmra.mrb[4].mxu1 %v48_v15 }
  0x57   :  { %204 = vmatprep.mubr.f32.mxu0 %v594_v0  ;;  %441 = vmatprep.mubr.f32.mxu1 %v49_v16 }
  0x5a   :  { %205 = vmatmul.mubr.f32.gmra.mrb[8].mxu0 %v47_v14  ;;  %442 = vmatmul.mubr.f32.gmra.mrb[6].mxu1 %v50_v17 }
  0x5b   :  { %210 = vmatprep.mubr.f32.mxu0 %v594_v0 }
  0x5e   :  { %211 = vmatmul.mubr.f32.gmra.mrb[10].mxu0 %v48_v15 }
  0x5f   :  { %216 = vmatprep.mubr.f32.mxu0 %v594_v0 }
  0x62   :  { %217 = vmatmul.mubr.f32.gmra.mrb[12].mxu0 %v49_v16 }
  0x63   :  { %222 = vmatprep.mubr.f32.mxu0 %v594_v0 }
  0x66   :  { %223 = vmatmul.mubr.f32.gmra.mrb[14].mxu0 %v50_v17 }
 0x11d   :  { %v182_v26 = vpop.f32.mrb[0].mxu0 }
 0x11e   :  { %v183_v27 = vadd.f32 %v182_v26, %v654_v23  ;;  %v184_v28 = vpop.f32.mrb[1].mxu0 }
 0x11f   :  { %v185_v0 = vadd.f32 %v184_v28, %v656_v24 }
 0x120   :  { %334 = vst [vmem:[#allocation7] sm:$0xff] %v183_v27 }
 0x121   :  { %335 = vst [vmem:[#allocation7 + $0x8] sm:$0xff] %v185_v0  ;;  %v188_v30 = vpop.f32.mrb[2].mxu0  ;;  %v434_v33 = vpop.f32.mrb[0].mxu1 }
 0x122   :  { %v189_v31 = vadd.f32 %v188_v30, %v654_v23  ;;  %v190_v32 = vpop.f32.mrb[3].mxu0  ;;  %v301_v35 = vadd.f32 %v434_v33, %v112_v29  ;;  %v295_v36 = vpop.f32.mrb[1].mxu1 }
 0x123   :  { %v191_v34 = vadd.f32 %v190_v32, %v656_v24  ;;  %v296_v37 = vadd.f32 %v295_v36, %v112_v29 }
 0x124   :  { %337 = vst [vmem:[#allocation7 + $0x18] sm:$0xff] %v189_v31  ;;  %339 = vst [vmem:[#allocation7 + $0x28] sm:$0xff] %v301_v35 }
 0x125   :  { %338 = vst [vmem:[#allocation7 + $0x20] sm:$0xff] %v191_v34  ;;  %v194_v38 = vpop.f32.mrb[4].mxu0  ;;  %336 = vst [vmem:[#allocation7 + $0x10] sm:$0xff] %v296_v37  ;;  %v437_v41 = vpop.f32.mrb[2].mxu1 }
 0x126   :  { %v195_v39 = vadd.f32 %v194_v38, %v654_v23  ;;  %v196_v40 = vpop.f32.mrb[5].mxu0  ;;  %v311_v43 = vadd.f32 %v437_v41, %v112_v29  ;;  %v305_v44 = vpop.f32.mrb[3].mxu1 }
 0x127   :  { %v197_v42 = vadd.f32 %v196_v40, %v656_v24  ;;  %v306_v45 = vadd.f32 %v305_v44, %v112_v29 }
 0x128   :  { %340 = vst [vmem:[#allocation7 + $0x30] sm:$0xff] %v195_v39  ;;  %345 = vst [vmem:[#allocation7 + $0x58] sm:$0xff] %v311_v43 }
 0x129   :  { %341 = vst [vmem:[#allocation7 + $0x38] sm:$0xff] %v197_v42  ;;  %v200_v46 = vpop.f32.mrb[6].mxu0  ;;  %342 = vst [vmem:[#allocation7 + $0x40] sm:$0xff] %v306_v45  ;;  %v440_v49 = vpop.f32.mrb[4].mxu1 }
 0x12a   :  { %v201_v47 = vadd.f32 %v200_v46, %v654_v23  ;;  %v202_v48 = vpop.f32.mrb[7].mxu0  ;;  %v321_v51 = vadd.f32 %v440_v49, %v112_v29  ;;  %v315_v52 = vpop.f32.mrb[5].mxu1 }
 0x12b   :  { %v203_v50 = vadd.f32 %v202_v48, %v656_v24  ;;  %v316_v53 = vadd.f32 %v315_v52, %v112_v29 }
 0x12c   :  { %343 = vst [vmem:[#allocation7 + $0x48] sm:$0xff] %v201_v47  ;;  %351 = vst [vmem:[#allocation7 + $0x88] sm:$0xff] %v321_v51 }
 0x12d   :  { %344 = vst [vmem:[#allocation7 + $0x50] sm:$0xff] %v203_v50  ;;  %v206_v54 = vpop.f32.mrb[8].mxu0  ;;  %348 = vst [vmem:[#allocation7 + $0x70] sm:$0xff] %v316_v53  ;;  %v443_v57 = vpop.f32.mrb[6].mxu1 }
 0x12e   :  { %v207_v55 = vadd.f32 %v206_v54, %v654_v23  ;;  %v208_v56 = vpop.f32.mrb[9].mxu0  ;;  %v331_v59 = vadd.f32 %v443_v57, %v112_v29  ;;  %v325_v60 = vpop.f32.mrb[7].mxu1 }
 0x12f   :  { %v209_v58 = vadd.f32 %v208_v56, %v656_v24  ;;  %v326_v61 = vadd.f32 %v325_v60, %v112_v29 }
 0x130   :  { %346 = vst [vmem:[#allocation7 + $0x60] sm:$0xff] %v207_v55  ;;  %357 = vst [vmem:[#allocation7 + $0xb8] sm:$0xff] %v331_v59 }
 0x131   :  { %347 = vst [vmem:[#allocation7 + $0x68] sm:$0xff] %v209_v58  ;;  %v212_v62 = vpop.f32.mrb[10].mxu0  ;;  %354 = vst [vmem:[#allocation7 + $0xa0] sm:$0xff] %v326_v61 }
 0x132   :  { %v213_v63 = vadd.f32 %v212_v62, %v654_v23  ;;  %v214_v1 = vpop.f32.mrb[11].mxu0 }
 0x133   :  { %v215_v2 = vadd.f32 %v214_v1, %v656_v24 }
 0x134   :  { %349 = vst [vmem:[#allocation7 + $0x78] sm:$0xff] %v213_v63 }
 0x135   :  { %350 = vst [vmem:[#allocation7 + $0x80] sm:$0xff] %v215_v2  ;;  %v218_v3 = vpop.f32.mrb[12].mxu0 }
 0x136   :  { %v219_v4 = vadd.f32 %v218_v3, %v654_v23  ;;  %v220_v5 = vpop.f32.mrb[13].mxu0 }
 0x137   :  { %v221_v6 = vadd.f32 %v220_v5, %v656_v24 }
 0x138   :  { %352 = vst [vmem:[#allocation7 + $0x90] sm:$0xff] %v219_v4 }
 0x139   :  { %353 = vst [vmem:[#allocation7 + $0x98] sm:$0xff] %v221_v6  ;;  %v224_v7 = vpop.f32.mrb[14].mxu0 }
 0x13a   :  { %v225_v8 = vadd.f32 %v224_v7, %v654_v23  ;;  %v226_v9 = vpop.f32.mrb[15].mxu0 }
 0x13b   :  { %v227_v10 = vadd.f32 %v226_v9, %v656_v24 }
 0x13c   :  { %355 = vst [vmem:[#allocation7 + $0xa8] sm:$0xff] %v225_v8 }
 0x13d   :  { %356 = vst [vmem:[#allocation7 + $0xb0] sm:$0xff] %v227_v10 }
 0x13e   :  { %571 = shalt.err (!%p568_p6)
}
 0x13f   :  { %s572_s17 = scalar_lea.hbm %s692_s3, 3072 }
 0x140   :  { %p573_p7 = scmp.ne.s32.totalorder %s692_s3, %s572_s17  ;;  %p576_p8 = scmp.lt.u32.totalorder %s572_s17, %s692_s3 }
 0x142   :  { %p578_p9 = pnand %p576_p8, %p573_p7 }
 0x144   :  { %581 = shalt.err (!%p578_p9)
}
 0x145   :  { %369 = dma.vmem_to_hbm [thread:$0]  %s364_s13, 3072, %s692_s3, [#allocation4], %s592_s0, %s592_s0, %s593_s9  }
 0x146   :  { %586 = dma.done.wait [#allocation4], 3072  }
 0x147   :  { %587 = vsyncadd [#allocation4], 4294964224 }
 0x148   :  { %373 = vsyncpa [#allocation3], 1 }
 0x149   :  { %374 = vsyncpa [#allocation6], 1 }
 0x14a   :  { %375 = vsyncpa [#allocation4], 1 }

</bundles_post_ra>
